<compile_context>
chip_gen: v7x
topology: tpu7x:2x2x1
jax: 0.10.0
libtpu: 0.0.40
codegen_flags: <defaults>
</compile_context>

<pallas_src>
import jax
import jax.numpy as jnp
from jax import lax
from jax.experimental import pallas as pl
from jax.experimental.pallas import tpu as pltpu

INPUT_SIZE = 32
UNITS = 16            # units_per_layer
NUM_LAYERS = 2        # two hidden Linear(+Dropout p=0)+ReLU blocks
LANE = 128
MAX_BATCH_TILE = 16384   # 16384 x 32 x 4 B = 2 MiB per x buffer -> safe under scoped VMEM


def mlp_kernel(x_ref, w1t_ref, b1_ref, w2t_ref, b2_ref, w3_ref, b3_ref, o_ref):
    # x tile arrives in its natural (tb, F) layout.  Contract over F so the hidden
    # activations land as (U, tb): batch on the lane axis, no wrapper-side transpose.
    h = lax.dot_general(
        w1t_ref[...], x_ref[...],
        dimension_numbers=(((1,), (1,)), ((), ())),
        preferred_element_type=jnp.float32)                        # (U, tb)
    h = jnp.maximum(h + b1_ref[...], 0.0)                          # Dropout(p=0) = identity
    h = jnp.dot(w2t_ref[...], h, preferred_element_type=jnp.float32)   # (U, tb)
    h = jnp.maximum(h + b2_ref[...], 0.0)
    # Head Linear(U -> 1): VPU multiply + sublane (XLU) reduce instead of an N=1 MXU matmul.
    out = jnp.sum(h * w3_ref[...], axis=0, keepdims=True)          # (1, tb), lane-dense
    o_ref[...] = (out + b3_ref[...]).astype(o_ref.dtype)


def _cdiv(a, b):
    return -(-a // b)


def _plan_tiles(B, *, max_tb=MAX_BATCH_TILE, lane=LANE):
    """Return (padded_batch, batch_tile).

    The tile is a multiple of 128 lanes (unmasked stores, aligned DMAs), capped at
    max_tb; whenever the padded batch has >=2 lane groups we keep >=2 grid steps so
    dimension_semantics=("parallel",) can use both TensorCores on v7x."""
    Bp = _cdiv(B, lane) * lane
    if Bp <= lane:
        return Bp, Bp                      # tiny batch: one 128-lane step
    n_steps = max(2, _cdiv(Bp, max_tb))
    tb = min(_cdiv(Bp, n_steps * lane) * lane, max_tb)
    Bp = _cdiv(Bp, tb) * tb
    return Bp, tb


def _x_block_spec(tb, feat, steps):
    idx = lambda i: (i, 0)
    if steps >= 3:
        try:
            # Deeper input pipeline once there are enough steps to benefit.
            return pl.BlockSpec((tb, feat), idx, pipeline_mode=pl.Buffered(3))
        except TypeError:   # pipeline_mode/Buffered unavailable -> default double-buffer
            pass
    return pl.BlockSpec((tb, feat), idx)


def mlp_forward(x, params, *, max_tb=MAX_BATCH_TILE, use_bf16=False):
    """x: (B, input_size) float32.  params: dict of w1,b1,w2,b2,w3,b3 stored PyTorch-like
    as (in_features, out_features) / (1, out_features).

    use_bf16 should only be enabled when x is already bf16 or the cast fuses into x's
    producer; otherwise the standalone cast costs an extra HBM pass that erases the win."""
    B, F = x.shape
    U = params["w1"].shape[1]
    Bp, tb = _plan_tiles(B, max_tb=max_tb)
    steps = Bp // tb

    store_dt = jnp.bfloat16 if use_bf16 else x.dtype
    xs = x.astype(store_dt)
    if Bp != B:
        # Pad the ragged tail (zeros); padded rows are computed but sliced off below.
        xs = jnp.pad(xs, ((0, Bp - B), (0, 0)))

    # Tiny weights (~3 KiB): pre-transpose on the wrapper side is negligible.
    w1t = params["w1"].T.astype(store_dt)                   # (U, F)
    w2t = params["w2"].T.astype(store_dt)                   # (U, U)
    w3c = params["w3"].astype(store_dt)                     # (U, 1) column
    b1c = params["b1"].reshape(U, 1).astype(jnp.float32)    # (U, 1)
    b2c = params["b2"].reshape(U, 1).astype(jnp.float32)    # (U, 1)
    b3c = params["b3"].reshape(1, 1).astype(jnp.float32)    # (1, 1)

    const = lambda shape: pl.BlockSpec(shape, lambda i: (0,) * len(shape))

    itemsize = jnp.dtype(store_dt).itemsize
    flops = 2 * Bp * (F * U + U * U + U)
    bytes_accessed = (Bp * F * itemsize                     # x read (dominant)
                      + Bp * 4                              # output write
                      + (F * U + U * U + 2 * U + 1) * itemsize)

    out_t = pl.pallas_call(
        mlp_kernel,
        out_shape=jax.ShapeDtypeStruct((1, Bp), jnp.float32),
        grid_spec=pl.GridSpec(
            grid=(steps,),
            in_specs=[
                _x_block_spec(tb, F, steps),                # x tile, natural (tb, F) layout
                const((U, F)),                              # w1ᵀ
                const((U, 1)),                              # b1
                const((U, U)),                              # w2ᵀ
                const((U, 1)),                              # b2
                const((U, 1)),                              # w3 column
                const((1, 1)),                              # b3
            ],
            out_specs=pl.BlockSpec((1, tb), lambda i: (0, i)),   # lane-dense output
        ),
        compiler_params=pltpu.CompilerParams(
            dimension_semantics=("parallel",),
        ),
        cost_estimate=pl.CostEstimate(
            flops=flops, transcendentals=0, bytes_accessed=bytes_accessed),
    )(xs, w1t, b1c, w2t, b2c, w3c, b3c)

    return out_t[:, :B].reshape(B, 1)   # back to PyTorch's (B, 1)


def init_params(key, input_size, units):
    """Deterministic init mimicking nn.Linear's U(-1/sqrt(fan_in), 1/sqrt(fan_in))."""
    ks = jax.random.split(key, 6)

    def lin(kw, kb, fan_in, fan_out):
        bound = 1.0 / jnp.sqrt(jnp.float32(fan_in))
        w = jax.random.uniform(kw, (fan_in, fan_out), jnp.float32, -bound, bound)
        b = jax.random.uniform(kb, (1, fan_out), jnp.float32, -bound, bound)
        return w, b

    w1, b1 = lin(ks[0], ks[1], input_size, units)
    w2, b2 = lin(ks[2], ks[3], units, units)
    w3, b3 = lin(ks[4], ks[5], units, 1)
    return {"w1": w1, "b1": b1, "w2": w2, "b2": b2, "w3": w3, "b3": b3}


def mlp_reference(x, p):
    h = jnp.maximum(x @ p["w1"] + p["b1"], 0.0)
    h = jnp.maximum(h @ p["w2"] + p["b2"], 0.0)
    return h @ p["w3"] + p["b3"]


if __name__ == "__main__":
    key = jax.random.PRNGKey(0)
    k_x, k_x2, k_p = jax.random.split(key, 3)

    params = init_params(k_p, INPUT_SIZE, UNITS)

    # Small batch: pads to one 128-lane grid step.
    B = 16
    x = jax.random.normal(k_x, (B, INPUT_SIZE), jnp.float32)
    ref = mlp_reference(x, params)
    out = jax.block_until_ready(mlp_forward(x, params))
    assert out.shape == (B, 1), out.shape
    assert jnp.allclose(out, ref, atol=1e-4, rtol=1e-4), (
        float(jnp.max(jnp.abs(out - ref)))
    )

    # Ragged batch (not a multiple of 128): exercises padding + >=2 parallel grid steps.
    B2 = 300
    x2 = jax.random.normal(k_x2, (B2, INPUT_SIZE), jnp.float32)
    ref2 = mlp_reference(x2, params)
    out2 = jax.block_until_ready(mlp_forward(x2, params))
    assert out2.shape == (B2, 1), out2.shape
    assert jnp.allclose(out2, ref2, atol=1e-4, rtol=1e-4), (
        float(jnp.max(jnp.abs(out2 - ref2)))
    )

    # Opt-in bf16 storage path (f32 accumulation); loose tolerance = expected quantization.
    out_bf16 = jax.block_until_ready(mlp_forward(x, params, use_bf16=True))
    assert out_bf16.shape == (B, 1), out_bf16.shape
    assert jnp.allclose(out_bf16, ref, atol=1e-1, rtol=1e-1), (
        float(jnp.max(jnp.abs(out_bf16 - ref)))
    )

    print("KERNEL_OK")
</pallas_src>

<mosaic_0001>
module attributes {stable_mosaic.version = 11 : i64} {
  func.func @mlp_kernel(%arg0: i32, %arg1: memref<128x32xf32, #tpu.memory_space<vmem>>, %arg2: memref<16x32xf32, #tpu.memory_space<vmem>>, %arg3: memref<16x1xf32, #tpu.memory_space<vmem>>, %arg4: memref<16x16xf32, #tpu.memory_space<vmem>>, %arg5: memref<16x1xf32, #tpu.memory_space<vmem>>, %arg6: memref<16x1xf32, #tpu.memory_space<vmem>>, %arg7: memref<1x1xf32, #tpu.memory_space<vmem>>, %arg8: memref<1x128xf32, #tpu.memory_space<vmem>>) attributes {dimension_semantics = [#tpu.dimension_semantics<parallel>], iteration_bounds = array<i64: 1>, scalar_prefetch = 0 : i64, scratch_operands = 0 : i64, tpu.core_type = #tpu.core_type<tc>, window_params = [{transform_indices = @transform_0, window_bounds = array<i64: 128, 32>}, {pipeline_mode = #tpu.pipeline_mode<synchronous>, transform_indices = @transform_1, window_bounds = array<i64: 16, 32>}, {pipeline_mode = #tpu.pipeline_mode<synchronous>, transform_indices = @transform_2, window_bounds = array<i64: 16, 1>}, {pipeline_mode = #tpu.pipeline_mode<synchronous>, transform_indices = @transform_3, window_bounds = array<i64: 16, 16>}, {pipeline_mode = #tpu.pipeline_mode<synchronous>, transform_indices = @transform_4, window_bounds = array<i64: 16, 1>}, {pipeline_mode = #tpu.pipeline_mode<synchronous>, transform_indices = @transform_5, window_bounds = array<i64: 16, 1>}, {pipeline_mode = #tpu.pipeline_mode<synchronous>, transform_indices = @transform_6, window_bounds = array<i64: 1, 1>}, {transform_indices = @transform_7, window_bounds = array<i64: 1, 128>}]} {
    %c0 = arith.constant 0 : index
    %c0_0 = arith.constant 0 : index
    %0 = vector.load %arg2[%c0, %c0_0] : memref<16x32xf32, #tpu.memory_space<vmem>>, vector<16x32xf32>
    %c0_1 = arith.constant 0 : index
    %c0_2 = arith.constant 0 : index
    %1 = vector.load %arg1[%c0_1, %c0_2] : memref<128x32xf32, #tpu.memory_space<vmem>>, vector<128x32xf32>
    %cst = arith.constant dense<0.000000e+00> : vector<16x128xf32>
    %2 = tpu.matmul %0, %1, %cst {dimension_numbers = #tpu.dot_dimension_numbers<[1], [1], [0], [0], [0, 0, 1, 0], [], []>} : vector<16x32xf32>, vector<128x32xf32>, vector<16x128xf32> -> vector<16x128xf32>
    %c0_3 = arith.constant 0 : index
    %c0_4 = arith.constant 0 : index
    %3 = vector.load %arg3[%c0_3, %c0_4] : memref<16x1xf32, #tpu.memory_space<vmem>>, vector<16x1xf32>
    %4 = vector.broadcast %3 : vector<16x1xf32> to vector<16x128xf32>
    %5 = arith.addf %2, %4 : vector<16x128xf32>
    %cst_5 = arith.constant 0.000000e+00 : f32
    %6 = vector.broadcast %cst_5 : f32 to vector<16x128xf32>
    %7 = arith.maximumf %5, %6 : vector<16x128xf32>
    %c0_6 = arith.constant 0 : index
    %c0_7 = arith.constant 0 : index
    %8 = vector.load %arg4[%c0_6, %c0_7] : memref<16x16xf32, #tpu.memory_space<vmem>>, vector<16x16xf32>
    %cst_8 = arith.constant dense<0.000000e+00> : vector<16x128xf32>
    %9 = tpu.matmul %8, %7, %cst_8 {dimension_numbers = #tpu.dot_dimension_numbers<[1], [0], [0], [1], [0, 0, 1, 1], [], []>} : vector<16x16xf32>, vector<16x128xf32>, vector<16x128xf32> -> vector<16x128xf32>
    %c0_9 = arith.constant 0 : index
    %c0_10 = arith.constant 0 : index
    %10 = vector.load %arg5[%c0_9, %c0_10] : memref<16x1xf32, #tpu.memory_space<vmem>>, vector<16x1xf32>
    %11 = vector.broadcast %10 : vector<16x1xf32> to vector<16x128xf32>
    %12 = arith.addf %9, %11 : vector<16x128xf32>
    %cst_11 = arith.constant 0.000000e+00 : f32
    %13 = vector.broadcast %cst_11 : f32 to vector<16x128xf32>
    %14 = arith.maximumf %12, %13 : vector<16x128xf32>
    %c0_12 = arith.constant 0 : index
    %c0_13 = arith.constant 0 : index
    %15 = vector.load %arg6[%c0_12, %c0_13] : memref<16x1xf32, #tpu.memory_space<vmem>>, vector<16x1xf32>
    %16 = vector.broadcast %15 : vector<16x1xf32> to vector<16x128xf32>
    %17 = arith.mulf %14, %16 : vector<16x128xf32>
    %cst_14 = arith.constant dense<0.000000e+00> : vector<128xf32>
    %18 = vector.multi_reduction <add>, %17, %cst_14 [0] : vector<16x128xf32> to vector<128xf32>
    %19 = vector.shape_cast %18 : vector<128xf32> to vector<1x128xf32>
    %c0_15 = arith.constant 0 : index
    %c0_16 = arith.constant 0 : index
    %20 = vector.load %arg7[%c0_15, %c0_16] : memref<1x1xf32, #tpu.memory_space<vmem>>, vector<1x1xf32>
    %21 = vector.broadcast %20 : vector<1x1xf32> to vector<1x128xf32>
    %22 = arith.addf %19, %21 : vector<1x128xf32>
    %c0_17 = arith.constant 0 : index
    %c0_18 = arith.constant 0 : index
    %23 = vector.load %arg8[%c0_17, %c0_18] : memref<1x128xf32, #tpu.memory_space<vmem>>, vector<1x128xf32>
    tpu.vector_store %arg8[%c0_17, %c0_18], %22 {strides = array<i32>} : memref<1x128xf32, #tpu.memory_space<vmem>>, vector<1x128xf32>,
    return
  }
  func.func @transform_0(%arg0: i32) -> (i32, i32) {
    %c0_i32 = arith.constant 0 : i32
    %c0_i32_0 = arith.constant 0 : i32
    return %arg0, %c0_i32 : i32, i32
  }
  func.func @transform_1(%arg0: i32) -> (i32, i32) {
    %c0_i32 = arith.constant 0 : i32
    %c0_i32_0 = arith.constant 0 : i32
    %c0_i32_1 = arith.constant 0 : i32
    return %c0_i32, %c0_i32_0 : i32, i32
  }
  func.func @transform_2(%arg0: i32) -> (i32, i32) {
    %c0_i32 = arith.constant 0 : i32
    %c0_i32_0 = arith.constant 0 : i32
    %c0_i32_1 = arith.constant 0 : i32
    return %c0_i32, %c0_i32_0 : i32, i32
  }
  func.func @transform_3(%arg0: i32) -> (i32, i32) {
    %c0_i32 = arith.constant 0 : i32
    %c0_i32_0 = arith.constant 0 : i32
    %c0_i32_1 = arith.constant 0 : i32
    return %c0_i32, %c0_i32_0 : i32, i32
  }
  func.func @transform_4(%arg0: i32) -> (i32, i32) {
    %c0_i32 = arith.constant 0 : i32
    %c0_i32_0 = arith.constant 0 : i32
    %c0_i32_1 = arith.constant 0 : i32
    return %c0_i32, %c0_i32_0 : i32, i32
  }
  func.func @transform_5(%arg0: i32) -> (i32, i32) {
    %c0_i32 = arith.constant 0 : i32
    %c0_i32_0 = arith.constant 0 : i32
    %c0_i32_1 = arith.constant 0 : i32
    return %c0_i32, %c0_i32_0 : i32, i32
  }
  func.func @transform_6(%arg0: i32) -> (i32, i32) {
    %c0_i32 = arith.constant 0 : i32
    %c0_i32_0 = arith.constant 0 : i32
    %c0_i32_1 = arith.constant 0 : i32
    return %c0_i32, %c0_i32_0 : i32, i32
  }
  func.func @transform_7(%arg0: i32) -> (i32, i32) {
    %c0_i32 = arith.constant 0 : i32
    %c0_i32_0 = arith.constant 0 : i32
    return %c0_i32, %arg0 : i32, i32
  }
}

</mosaic_0001>

<bundles_post_ra>
// kernel: tpu_custom_call.1
= control target key start
LH: loop header
LB: loop body
LE: loop exit
PB: predicated region body
PF: predicated region fallthrough
CT: control target
= control target key end

     0   :  { %s677_s0 = inlined_call_operand.vmem [shape: f32[128,32], index: 0, kind: input, shape index: {}]   ;;  %s678_s1 = inlined_call_operand.vmem [shape: f32[16,32], index: 1, kind: input, shape index: {}]   ;;  %s679_s2 = inlined_call_operand.vmem [shape: f32[16,1], index: 2, kind: input, shape index: {}]   ;;  %s680_s3 = inlined_call_operand.vmem [shape: f32[16,16], index: 3, kind: input, shape index: {}]   ;;  %s681_s4 = inlined_call_operand.vmem [shape: f32[16,1], index: 4, kind: input, shape index: {}]   ;;  %s682_s5 = inlined_call_operand.vmem [shape: f32[16,1], index: 5, kind: input, shape index: {}]   ;;  %s683_s6 = inlined_call_operand.<no memory space> [shape: f32[1,1], index: 6, kind: input, shape index: {}]   ;;  %s684_s7 = inlined_call_operand.hbm [shape: f32[1,128], index: 7, kind: output, shape index: {}]  }
   0x1   :  { %v12_v0 = vstv %s683_s6 }
   0x2   :  { %13 = vst [vmem:[#allocation2] sm:$0x1] %v12_v0 }
   0x3   :  { %v31_v1 = vld [vmem:[%s677_s0] sm:$0xff]  ;;  %v32_v2 = vld [vmem:[%s677_s0 + $0x8] sm:$0xff]  ;;  %vm59_vm0 = vcmask 261120   ;;  %v33_v3 = vld [vmem:[%s677_s0 + $0x10] sm:$0xff]  ;;  %v500_v7 = vmov 0  }
   0x4   :  { %v420_v4 = vpack.c.bf16 %v32_v2, %v31_v1  ;;  %vm556_vm1 = vmpackc.low %vm59_vm0, %vm59_vm0  ;;  %v34_v6 = vld [vmem:[%s677_s0 + $0x18] sm:$0xff]  ;;  %474 = vset.pattern.permute.xlu0 %v500_v7  ;;  %475 = vset.pattern.permute.xlu1 %v500_v7  ;;  %v29_v9 = vld [vmem:[%s678_s1] sm:$0xff] }
   0x5   :  { %v426_v8 = vpack.c.bf16 %v34_v6, %v33_v3  ;;  %v35_v10 = vld [vmem:[%s677_s0 + $0x20] sm:$0xff]  ;;  %v36_v11 = vld [vmem:[%s677_s0 + $0x28] sm:$0xff]  ;;  %410 = vmatprep.mubr.msk.f32.mxu0 %vm59_vm0, %v29_v9 }
   0x6   :  { %422 = vmatprep.subr.msk.bf16.mxu0 %vm556_vm1, %v420_v4  ;;  %v47_v12 = vld [vmem:[%s679_s2] sm:$0xff] }
   0x7   :  { %425 = vmatpush3.bf16.xpose.msk.msra.mxu0 %vm556_vm1, %v420_v4  ;;  %51 = vperm.xlu0 %474, %v47_v12  }
   0x8   :  { %428 = vmatprep.subr.msk.bf16.mxu0 %vm556_vm1, %v426_v8 }
   0x9   :  { %14 = vsyncpa [#allocation4], 0  ;;  %v48_v13 = vld [vmem:[%s679_s2 + $0x8] sm:$0xff]  ;;  %v432_v14 = vpack.c.bf16 %v36_v11, %v35_v10  ;;  %v289_v15 = vld [vmem:[%s682_s5] sm:$0xff]  ;;  %vm205_vm2 = vcmask 130048   ;;  %v316_v59 = vlaneseq }
   0xa   :  { %v37_v16 = vld [vmem:[%s677_s0 + $0x30] sm:$0xff]  ;;  %v38_v17 = vld [vmem:[%s677_s0 + $0x38] sm:$0xff]  ;;  %v310_v18 = vld [vmem:[#allocation2] sm:$0x1] }
   0xb   :  { %56 = vperm.xlu0 %474, %v48_v13   ;;  %v438_v19 = vpack.c.bf16 %v38_v17, %v37_v16  ;;  %v39_v20 = vld [vmem:[%s677_s0 + $0x40] sm:$0xff]  ;;  %v40_v21 = vld [vmem:[%s677_s0 + $0x48] sm:$0xff]  ;;  %v41_v23 = vld [vmem:[%s677_s0 + $0x50] sm:$0xff]  ;;  %v317_v62 = vshrl.u32 %v316_v59, 7 }
   0xc   :  { %v444_v22 = vpack.c.bf16 %v40_v21, %v39_v20  ;;  %v42_v24 = vld [vmem:[%s677_s0 + $0x58] sm:$0xff]  ;;  %v43_v26 = vld [vmem:[%s677_s0 + $0x60] sm:$0xff]  ;;  %v44_v27 = vld [vmem:[%s677_s0 + $0x68] sm:$0xff] }
   0xd   :  { %v450_v25 = vpack.c.bf16 %v42_v24, %v41_v23  ;;  %v456_v28 = vpack.c.bf16 %v44_v27, %v43_v26  ;;  %v45_v29 = vld [vmem:[%s677_s0 + $0x70] sm:$0xff]  ;;  %v46_v30 = vld [vmem:[%s677_s0 + $0x78] sm:$0xff]  ;;  %v30_v32 = vld [vmem:[%s678_s1 + $0x8] sm:$0xff]  ;;  %v318_v1 = vsub.s32 0, %v317_v62 }
   0xe   :  { %v462_v31 = vpack.c.bf16 %v46_v30, %v45_v29  ;;  %v191_v33 = vld [vmem:[%s680_s3] sm:$0xff]  ;;  %v194_v35 = vld [vmem:[%s681_s4 + $0x8] sm:$0xff] }
   0xf   :  { %431 = vmatpush3.bf16.xpose.msk.msra.mxu0 %vm556_vm1, %v426_v8  ;;  %293 = vperm.xlu0 %474, %v289_v15   ;;  %v193_v34 = vld [vmem:[%s681_s4] sm:$0xff]  ;;  %v290_v36 = vld [vmem:[%s682_s5 + $0x8] sm:$0xff] }
  0x10   :  { %434 = vmatprep.subr.msk.bf16.mxu0 %vm556_vm1, %v432_v14  ;;  %417 = vmatprep.mubr.msk.f32.mxu1 %vm205_vm2, %v191_v33  ;;  %v192_v46 = vld [vmem:[%s680_s3 + $0x8] sm:$0xff]  ;;  %s501_s3 = smov [#allocation3]  }
  0x11   :  { %197 = vperm.xlu1 %475, %v193_v34   ;;  %s328_s4 = sshll.u32 %s501_s3, 4  ;;  %s329_s4 = int_to_ptr.vmem [resolvable:$true] %s328_s4 }
  0x12   :  { %s476_s5 = scalar_lea.vmem %s329_s4, 16  ;;  %s480_s26 = scalar_lea.vmem %s329_s4, 32 }
  0x13   :  { %313 = vperm.xlu0 %474, %v310_v18   ;;  %p477_p0 = scmp.ne.s32.totalorder %s329_s4, %s476_s5  ;;  %p481_p1 = scmp.lt.s32.totalorder %s329_s4, %s329_s4 }
  0x14   :  { %p482_p2 = scmp.lt.s32.totalorder %s480_s26, %s476_s5 }
  0x15   :  { %202 = vperm.xlu1 %475, %v194_v35  }
  0x16   :  { %p483_p3 = por %p482_p2, %p481_p1 }
  0x17   :  { %437 = vmatpush3.bf16.xpose.msk.msra.mxu0 %vm556_vm1, %v432_v14 }
  0x18   :  { %440 = vmatprep.subr.msk.bf16.mxu0 %vm556_vm1, %v438_v19  ;;  %p484_p4 = pnand %p483_p3, %p477_p0 }
  0x19   :  { %298 = vperm.xlu1 %475, %v290_v36  }
  0x1f   :  { %443 = vmatpush3.bf16.xpose.msk.msra.mxu0 %vm556_vm1, %v438_v19 }
  0x20   :  { %446 = vmatprep.subr.msk.bf16.mxu0 %vm556_vm1, %v444_v22 }
  0x27   :  { %449 = vmatpush3.bf16.xpose.msk.msra.mxu0 %vm556_vm1, %v444_v22 }
  0x28   :  { %452 = vmatprep.subr.msk.bf16.mxu0 %vm556_vm1, %v450_v25 }
  0x2f   :  { %455 = vmatpush3.bf16.xpose.msk.msra.mxu0 %vm556_vm1, %v450_v25 }
  0x30   :  { %458 = vmatprep.subr.msk.bf16.mxu0 %vm556_vm1, %v456_v28 }
  0x37   :  { %461 = vmatpush3.bf16.xpose.msk.msra.mxu0 %vm556_vm1, %v456_v28 }
  0x38   :  { %464 = vmatprep.subr.msk.bf16.mxu0 %vm556_vm1, %v462_v31 }
  0x3f   :  { %467 = vmatpush3.bf16.xpose.msk.msra.mxu0 %vm556_vm1, %v462_v31 }
  0x46   :  { %411 = vmatmul.mubr.msk.f32.vlgmr.msra.gmra.mrb[0].mxu0 %vm59_vm0, %v30_v32 }
  0x86   :  { %v52_v37 = vpop.permute.xlu0 %51 }
  0x8a   :  { %v57_v38 = vpop.permute.xlu0 %56 }
  0x8e   :  { %v294_v56 = vpop.permute.xlu0 %293 }
  0x90   :  { %v198_v47 = vpop.permute.xlu1 %197 }
  0x92   :  { %v314_v3 = vpop.permute.xlu0 %313 }
  0x93   :  { %v319_v5 = vrot.slane %v314_v3, %v318_v1 }
  0x94   :  { %v203_v48 = vpop.permute.xlu1 %202 }
  0x98   :  { %v299_v54 = vpop.permute.xlu1 %298 }
 0x119   :  { %v412_v39 = vpop.f32.mrb[0].mxu0 }
 0x11a   :  { %v186_v40 = vadd.f32 %v412_v39, %v57_v38  ;;  %v180_v41 = vpop.f32.mrb[1].mxu0 }
 0x11b   :  { %v181_v42 = vadd.f32 %v180_v41, %v52_v37 }
 0x11c   :  { %v190_v43 = vmax.f32 %v186_v40, 0.0 }
 0x11d   :  { %v189_v44 = vmax.f32 %v181_v42, 0.0 }
 0x11f   :  { %v468_v45 = vpack.c.bf16 %v190_v43, %v189_v44 }
 0x121   :  { %469 = vmatprep.subr.bf16.mxu1 %v468_v45 }
 0x122   :  { %471 = vmatpush3.bf16.msra.mxu1 %v468_v45 }
 0x125   :  { %418 = vmatmul.mubr.msk.f32.vlgmr.msra.gmra.mrb[0].mxu1 %vm205_vm2, %v192_v46 }
 0x1f8   :  { %v419_v49 = vpop.f32.mrb[0].mxu1 }
 0x1f9   :  { %v284_v50 = vadd.f32 %v419_v49, %v203_v48  ;;  %v278_v51 = vpop.f32.mrb[1].mxu1 }
 0x1fa   :  { %v279_v52 = vadd.f32 %v278_v51, %v198_v47 }
 0x1fb   :  { %v288_v53 = vmax.f32 %v284_v50, 0.0 }
 0x1fc   :  { %v287_v55 = vmax.f32 %v279_v52, 0.0 }
 0x1fd   :  { %v302_v57 = vmul.f32 %v299_v54, %v288_v53 }
 0x1fe   :  { %v301_v58 = vmul.f32 %v294_v56, %v287_v55 }
 0x200   :  { %v303_v60 = vadd.f32 %v302_v57, %v301_v58 }
 0x202   :  { %v304_v61 = vrot.slane %v303_v60, 4 }
 0x204   :  { %v305_v63 = vadd.f32 %v304_v61, %v303_v60 }
 0x206   :  { %v306_v0 = vrot.slane %v305_v63, 2 }
 0x208   :  { %v307_v2 = vadd.f32 %v306_v0, %v305_v63 }
 0x20a   :  { %v308_v4 = vrot.slane %v307_v2, 1 }
 0x20c   :  { %v309_v6 = vadd.f32 %v308_v4, %v307_v2 }
 0x20e   :  { %v320_v7 = vadd.f32 %v319_v5, %v309_v6 }
 0x210   :  { %321 = vst [vmem:[#allocation3] sm:$0x1] %v320_v7 }
 0x211   :  { %487 = shalt.err (!%p484_p4)
}
 0x212   :  { %s488_s29 = scalar_lea.hbm %s684_s7, 16 }
 0x213   :  { %p489_p5 = scmp.ne.s32.totalorder %s684_s7, %s488_s29  ;;  %p492_p6 = scmp.lt.u32.totalorder %s488_s29, %s684_s7 }
 0x215   :  { %p494_p7 = pnand %p492_p6, %p489_p5 }
 0x217   :  { %497 = shalt.err (!%p494_p7)
}
 0x218   :  { %331 = dma.vmem_to_hbm [thread:$0]  %s329_s4, 16, %s684_s7, [#allocation4]  }
 0x219   :  { %498 = dma.done.wait [#allocation4], 16  }
 0x21a   :  { %499 = vsyncadd [#allocation4], 4294967280 }
 0x21b   :  { %335 = vsyncpa [#allocation4], 1 }

</bundles_post_ra>
